<compile_context>
chip_gen: v5e
topology: v5e:2x2
jax: 0.10.0
libtpu: 0.0.40
codegen_flags: <defaults>
</compile_context>

<pallas_src>
import jax
import jax.numpy as jnp
from jax.experimental import pallas as pl
from jax.experimental.pallas import tpu as pltpu

HIDDEN = 32


def _monotonic_mlp_kernel(x_ref, w1_ref, b1_ref, w2t_ref, b2_ref, w3_ref,
                          b3_ref, o_ref):
    # x:   (1, TN)   lane-dense batch
    # w1:  (H, 1)    b1: (H, 1)
    # w2t: (H, H)    (= fc2_w.T)      b2: (H, 1)
    # w3:  (H, 1)    b3: (1, 1) scalar in SMEM
    # o:   (1, TN)   lane-dense output
    x = x_ref[...].astype(jnp.float32)                        # (1, TN)

    # fc1: K=1 contraction is an outer product -> VPU broadcast mul-add (no MXU).
    z1 = w1_ref[...] * x + b1_ref[...]                        # (H, TN)
    h1 = 0.5 * jnp.tanh(0.5 * z1) + 0.5                       # sigmoid, 1 EUP op

    # fc2 with |W| (monotonicity): (H,H) @ (H,TN) on the MXU, f32 accumulate.
    z2 = jnp.dot(jnp.abs(w2t_ref[...]), h1,
                 preferred_element_type=jnp.float32) + b2_ref[...]
    h2 = 0.5 * jnp.tanh(0.5 * z2) + 0.5                       # (H, TN)

    # fc3 with |W|: 1-wide result -> elementwise mul + cross-sublane sum (XLU).
    out = jnp.sum(jnp.abs(w3_ref[...]) * h2, axis=0, keepdims=True)
    out = out + b3_ref[0, 0]                                  # (1, TN)
    o_ref[...] = out.astype(o_ref.dtype)


def monotonic_mlp(x, params, *, tile_n=2048):
    """x: (N, 1) f32.

    params (kernel layout):
      w1 (H,1), b1 (H,1), w2t (H,H) = fc2_w.T, b2 (H,1), w3 (H,1), b3 (1,1).
    Returns (N, 1) f32. Handles N not a multiple of the tile via lane padding.
    """
    N = x.shape[0]
    H = params["w1"].shape[0]

    # Lane-dense presentation: batch on the 128-lane axis.
    x_row = x.reshape(1, N).astype(jnp.float32)
    n_pad = pl.cdiv(N, 128) * 128
    tile = min(tile_n, n_pad)
    tile = pl.cdiv(tile, 128) * 128
    n_pad = pl.cdiv(n_pad, tile) * tile
    if n_pad != N:
        x_row = jnp.pad(x_row, ((0, 0), (0, n_pad - N)))

    grid = (n_pad // tile,)
    full = lambda i: (0, 0)

    out_row = pl.pallas_call(
        _monotonic_mlp_kernel,
        out_shape=jax.ShapeDtypeStruct((1, n_pad), jnp.float32),
        grid_spec=pltpu.PrefetchScalarGridSpec(
            num_scalar_prefetch=0,
            grid=grid,
            in_specs=[
                pl.BlockSpec((1, tile), lambda i: (0, i)),   # x  (lane-dense tile)
                pl.BlockSpec((H, 1), full),                  # w1
                pl.BlockSpec((H, 1), full),                  # b1
                pl.BlockSpec((H, H), full),                  # w2t
                pl.BlockSpec((H, 1), full),                  # b2
                pl.BlockSpec((H, 1), full),                  # w3
                pl.BlockSpec(memory_space=pltpu.MemorySpace.SMEM),  # b3 scalar
            ],
            out_specs=pl.BlockSpec((1, tile), lambda i: (0, i)),
        ),
        compiler_params=pltpu.CompilerParams(
            dimension_semantics=("parallel",)),
    )(x_row, params["w1"], params["b1"], params["w2t"], params["b2"],
      params["w3"], params["b3"])

    return out_row[:, :N].reshape(N, 1)


def init_params(key, hidden=HIDDEN):
    k1, k2, k3 = jax.random.split(key, 3)
    # fc1: nn.Linear(1, hidden); xavier_uniform_ on weight (hidden, 1); bias = 0.1.
    bound = (6.0 / (1 + hidden)) ** 0.5
    w1 = jax.random.uniform(k1, (hidden, 1), jnp.float32, -bound, bound)
    b1 = jnp.full((hidden, 1), 0.1, jnp.float32)
    # fc2_w = rand(hidden, hidden) * 0.1 ; stored transposed for column activations.
    fc2_w = jax.random.uniform(k2, (hidden, hidden), jnp.float32) * 0.1
    w2t = fc2_w.T
    b2 = jnp.zeros((hidden, 1), jnp.float32)
    # fc3_w = rand(hidden, 1) * 0.1 ; fc3_b zeros.
    w3 = jax.random.uniform(k3, (hidden, 1), jnp.float32) * 0.1
    b3 = jnp.zeros((1, 1), jnp.float32)
    return {"w1": w1, "b1": b1, "w2t": w2t, "b2": b2, "w3": w3, "b3": b3}


def reference_forward(x, p):
    # Matches the PyTorch module (row-major activations, exp-based sigmoid).
    fc2_w = p["w2t"].T
    h1 = jax.nn.sigmoid(x @ p["w1"].T + p["b1"].T)
    h2 = jax.nn.sigmoid(h1 @ jnp.abs(fc2_w) + p["b2"].T)
    return h2 @ jnp.abs(p["w3"]) + p["b3"]


if __name__ == "__main__":
    key = jax.random.PRNGKey(0)
    kx, kp = jax.random.split(key)

    N = 500  # deliberately not a multiple of 128: exercises lane padding
    x = jax.random.uniform(kx, (N, 1), jnp.float32)  # CDF query points in [0, 1)
    params = init_params(kp, HIDDEN)

    # tile_n=256 -> grid=(2,): both v7x TensorCores get a parallel step.
    out = monotonic_mlp(x, params, tile_n=256)
    out = jax.block_until_ready(out)

    ref = reference_forward(x, params)
    assert out.shape == (N, 1) and out.dtype == jnp.float32
    assert jnp.allclose(out, ref, atol=2e-5, rtol=1e-5), "mismatch vs reference"

    print("KERNEL_OK")
</pallas_src>

<mosaic_0001>
module attributes {stable_mosaic.version = 11 : i64} {
  func.func @_monotonic_mlp_kernel(%arg0: i32, %arg1: memref<1x256xf32, #tpu.memory_space<vmem>>, %arg2: memref<32x1xf32, #tpu.memory_space<vmem>>, %arg3: memref<32x1xf32, #tpu.memory_space<vmem>>, %arg4: memref<32x32xf32, #tpu.memory_space<vmem>>, %arg5: memref<32x1xf32, #tpu.memory_space<vmem>>, %arg6: memref<32x1xf32, #tpu.memory_space<vmem>>, %arg7: memref<1x1xf32, #tpu.memory_space<smem>>, %arg8: memref<1x256xf32, #tpu.memory_space<vmem>>) attributes {dimension_semantics = [#tpu.dimension_semantics<parallel>], iteration_bounds = array<i64: 2>, scalar_prefetch = 0 : i64, scratch_operands = 0 : i64, tpu.core_type = #tpu.core_type<tc>, window_params = [{transform_indices = @transform_0, window_bounds = array<i64: 1, 256>}, {pipeline_mode = #tpu.pipeline_mode<synchronous>, transform_indices = @transform_1, window_bounds = array<i64: 32, 1>}, {pipeline_mode = #tpu.pipeline_mode<synchronous>, transform_indices = @transform_2, window_bounds = array<i64: 32, 1>}, {pipeline_mode = #tpu.pipeline_mode<synchronous>, transform_indices = @transform_3, window_bounds = array<i64: 32, 32>}, {pipeline_mode = #tpu.pipeline_mode<synchronous>, transform_indices = @transform_4, window_bounds = array<i64: 32, 1>}, {pipeline_mode = #tpu.pipeline_mode<synchronous>, transform_indices = @transform_5, window_bounds = array<i64: 32, 1>}, {transform_indices = @transform_6, window_bounds = array<i64: 1, 1>}, {transform_indices = @transform_7, window_bounds = array<i64: 1, 256>}]} {
    %c0 = arith.constant 0 : index
    %c0_0 = arith.constant 0 : index
    %0 = vector.load %arg1[%c0, %c0_0] : memref<1x256xf32, #tpu.memory_space<vmem>>, vector<1x256xf32>
    %c0_1 = arith.constant 0 : index
    %c0_2 = arith.constant 0 : index
    %1 = vector.load %arg2[%c0_1, %c0_2] : memref<32x1xf32, #tpu.memory_space<vmem>>, vector<32x1xf32>
    %2 = vector.broadcast %1 : vector<32x1xf32> to vector<32x256xf32>
    %3 = vector.broadcast %0 : vector<1x256xf32> to vector<32x256xf32>
    %4 = arith.mulf %2, %3 : vector<32x256xf32>
    %c0_3 = arith.constant 0 : index
    %c0_4 = arith.constant 0 : index
    %5 = vector.load %arg3[%c0_3, %c0_4] : memref<32x1xf32, #tpu.memory_space<vmem>>, vector<32x1xf32>
    %6 = vector.broadcast %5 : vector<32x1xf32> to vector<32x256xf32>
    %7 = arith.addf %4, %6 : vector<32x256xf32>
    %cst = arith.constant 5.000000e-01 : f32
    %8 = vector.broadcast %cst : f32 to vector<32x256xf32>
    %9 = arith.mulf %8, %7 : vector<32x256xf32>
    %10 = math.tanh %9 : vector<32x256xf32>
    %cst_5 = arith.constant 5.000000e-01 : f32
    %11 = vector.broadcast %cst_5 : f32 to vector<32x256xf32>
    %12 = arith.mulf %11, %10 : vector<32x256xf32>
    %cst_6 = arith.constant 5.000000e-01 : f32
    %13 = vector.broadcast %cst_6 : f32 to vector<32x256xf32>
    %14 = arith.addf %12, %13 : vector<32x256xf32>
    %c0_7 = arith.constant 0 : index
    %c0_8 = arith.constant 0 : index
    %15 = vector.load %arg4[%c0_7, %c0_8] : memref<32x32xf32, #tpu.memory_space<vmem>>, vector<32x32xf32>
    %16 = math.absf %15 : vector<32x32xf32>
    %cst_9 = arith.constant dense<0.000000e+00> : vector<32x256xf32>
    %17 = tpu.matmul %16, %14, %cst_9 {dimension_numbers = #tpu.dot_dimension_numbers<[1], [0], [0], [1], [0, 0, 1, 1], [], []>} : vector<32x32xf32>, vector<32x256xf32>, vector<32x256xf32> -> vector<32x256xf32>
    %c0_10 = arith.constant 0 : index
    %c0_11 = arith.constant 0 : index
    %18 = vector.load %arg5[%c0_10, %c0_11] : memref<32x1xf32, #tpu.memory_space<vmem>>, vector<32x1xf32>
    %19 = vector.broadcast %18 : vector<32x1xf32> to vector<32x256xf32>
    %20 = arith.addf %17, %19 : vector<32x256xf32>
    %cst_12 = arith.constant 5.000000e-01 : f32
    %21 = vector.broadcast %cst_12 : f32 to vector<32x256xf32>
    %22 = arith.mulf %21, %20 : vector<32x256xf32>
    %23 = math.tanh %22 : vector<32x256xf32>
    %cst_13 = arith.constant 5.000000e-01 : f32
    %24 = vector.broadcast %cst_13 : f32 to vector<32x256xf32>
    %25 = arith.mulf %24, %23 : vector<32x256xf32>
    %cst_14 = arith.constant 5.000000e-01 : f32
    %26 = vector.broadcast %cst_14 : f32 to vector<32x256xf32>
    %27 = arith.addf %25, %26 : vector<32x256xf32>
    %c0_15 = arith.constant 0 : index
    %c0_16 = arith.constant 0 : index
    %28 = vector.load %arg6[%c0_15, %c0_16] : memref<32x1xf32, #tpu.memory_space<vmem>>, vector<32x1xf32>
    %29 = math.absf %28 : vector<32x1xf32>
    %30 = vector.broadcast %29 : vector<32x1xf32> to vector<32x256xf32>
    %31 = arith.mulf %30, %27 : vector<32x256xf32>
    %cst_17 = arith.constant dense<0.000000e+00> : vector<256xf32>
    %32 = vector.multi_reduction <add>, %31, %cst_17 [0] : vector<32x256xf32> to vector<256xf32>
    %33 = vector.shape_cast %32 : vector<256xf32> to vector<1x256xf32>
    %c0_18 = arith.constant 0 : index
    %c0_19 = arith.constant 0 : index
    %34 = memref.load %arg7[%c0_18, %c0_19] : memref<1x1xf32, #tpu.memory_space<smem>>
    %35 = vector.broadcast %34 : f32 to vector<1x256xf32>
    %36 = arith.addf %33, %35 : vector<1x256xf32>
    %c0_20 = arith.constant 0 : index
    %c0_21 = arith.constant 0 : index
    %37 = vector.load %arg8[%c0_20, %c0_21] : memref<1x256xf32, #tpu.memory_space<vmem>>, vector<1x256xf32>
    tpu.vector_store %arg8[%c0_20, %c0_21], %36 {strides = array<i32>} : memref<1x256xf32, #tpu.memory_space<vmem>>, vector<1x256xf32>,
    return
  }
  func.func @transform_0(%arg0: i32) -> (i32, i32) {
    %c0_i32 = arith.constant 0 : i32
    %c0_i32_0 = arith.constant 0 : i32
    return %c0_i32, %arg0 : i32, i32
  }
  func.func @transform_1(%arg0: i32) -> (i32, i32) {
    %c0_i32 = arith.constant 0 : i32
    %c0_i32_0 = arith.constant 0 : i32
    %c0_i32_1 = arith.constant 0 : i32
    return %c0_i32, %c0_i32_0 : i32, i32
  }
  func.func @transform_2(%arg0: i32) -> (i32, i32) {
    %c0_i32 = arith.constant 0 : i32
    %c0_i32_0 = arith.constant 0 : i32
    %c0_i32_1 = arith.constant 0 : i32
    return %c0_i32, %c0_i32_0 : i32, i32
  }
  func.func @transform_3(%arg0: i32) -> (i32, i32) {
    %c0_i32 = arith.constant 0 : i32
    %c0_i32_0 = arith.constant 0 : i32
    %c0_i32_1 = arith.constant 0 : i32
    return %c0_i32, %c0_i32_0 : i32, i32
  }
  func.func @transform_4(%arg0: i32) -> (i32, i32) {
    %c0_i32 = arith.constant 0 : i32
    %c0_i32_0 = arith.constant 0 : i32
    %c0_i32_1 = arith.constant 0 : i32
    return %c0_i32, %c0_i32_0 : i32, i32
  }
  func.func @transform_5(%arg0: i32) -> (i32, i32) {
    %c0_i32 = arith.constant 0 : i32
    %c0_i32_0 = arith.constant 0 : i32
    %c0_i32_1 = arith.constant 0 : i32
    return %c0_i32, %c0_i32_0 : i32, i32
  }
  func.func @transform_6(%arg0: i32) -> (i32, i32) {
    %c0_i32 = arith.constant 0 : i32
    %c0_i32_0 = arith.constant 0 : i32
    %c0_i32_1 = arith.constant 0 : i32
    return %c0_i32, %c0_i32_0 : i32, i32
  }
  func.func @transform_7(%arg0: i32) -> (i32, i32) {
    %c0_i32 = arith.constant 0 : i32
    %c0_i32_0 = arith.constant 0 : i32
    return %c0_i32, %arg0 : i32, i32
  }
}

</mosaic_0001>

<bundles_post_ra>
// kernel: tpu_custom_call.1
= control target key start
LH: loop header
LB: loop body
LE: loop exit
PB: predicated region body
PF: predicated region fallthrough
CT: control target
= control target key end

     0   :  { %s1021_s0 = inlined_call_operand.vmem [shape: f32[1,512], index: 0, kind: input, shape index: {}]   ;;  %s1022_s1 = inlined_call_operand.vmem [shape: f32[32,1], index: 1, kind: input, shape index: {}]   ;;  %s1023_s2 = inlined_call_operand.vmem [shape: f32[32,1], index: 2, kind: input, shape index: {}]   ;;  %s1024_s3 = inlined_call_operand.vmem [shape: f32[32,32], index: 3, kind: input, shape index: {}]   ;;  %s1025_s4 = inlined_call_operand.vmem [shape: f32[32,1], index: 4, kind: input, shape index: {}]   ;;  %s1026_s5 = inlined_call_operand.vmem [shape: f32[32,1], index: 5, kind: input, shape index: {}]   ;;  %s1027_s6 = inlined_call_operand.<no memory space> [shape: f32[1,1], index: 6, kind: input, shape index: {}]   ;;  %s1028_s7 = inlined_call_operand.hbm [shape: f32[1,512], index: 7, kind: output, shape index: {}]  }
   0x1   :  { %12 = sst [smem:[#allocation2]] %s1027_s6 }
   0x2   :  { %13 = vsyncpa [#allocation4], 0 }
   0x3   :  { %15 = vsyncpa [#allocation4 + $0x1], 0  ;;  %s865_s26 = smov 0   ;;  %s867_s27 = smov 0  }
   0x4   :  { %s869_s28 = smov 0   ;;  %s871_s29 = smov 0  }
   0x5 LB: > { %s655_s6 = sadd.s32 4294967295, %s819_s29   ;;  %s656_s30 = sadd.s32 4294967294, %s819_s29   ;;  %s819_s29 = sphi %s871_s29, %s1034_s29   ;;  %s815_s28 = sphi %s869_s28, %s1033_s28   ;;  %s811_s27 = sphi %s867_s27, %s1032_s27   ;;  %s807_s26 = sphi %s865_s26, %s1031_s26  }
   0x6   : > { %s888_s8 = sadd.s32 1, %s819_s29   ;;  %s180_s9 = sadd.s32 1, %s815_s28 }
   0x7   : > { %s177_s10 = ssub.s32 %s819_s29, %s888_s8  ;;  %p190_p0 = scmp.ne.s32.totalorder %s815_s28, %s811_s27 }
   0x8   : > { %p178_p1 = scmp.eq.s32.totalorder %s177_s10, 0  ;;  %p191_p2 = scmp.eq.s32.totalorder %s655_s6, 1 }
   0x9   : > { %p196_p3 = scmp.ne.s32.totalorder %s811_s27, %s807_s26  ;;  %p197_p4 = scmp.eq.s32.totalorder %s656_s30, 1 }
   0xa   : > { %s900_s11 = scalar_select %p178_p1, %s815_s28, %s180_s9  }
   0xb   : > { %p902_p5 = por %p191_p2, %p190_p0  ;;  %p906_p6 = por %p197_p4, %p196_p3 }
   0xc   : > { %p659_p7 = scmp.ge.s32.totalorder %s819_s29, 1  ;;  %p241_p8 = scmp.lt.s32.totalorder %s819_s29, 3 }
   0xe   : > { %p242_p9 = pnand %p659_p7, %p241_p8 }
   0xf   : > { %s962_s16 = sshll.u32 (!%p242_p9), %s655_s6, 1  ;;  %s569_s10 = sld [smem:[#allocation2]] (!%p242_p9) }
  0x10   : > { %245 = sbr.rel (%p242_p9) target bundleno = 354 (0x162), region = 48  ;;  %p273_p10 = scmp.lt.s32.totalorder (!%p242_p9), %s962_s16, 3 }
  0x11   : > { %s269_s14 = sand.u32 (!%p242_p9), 1, %s811_s27   ;;  %s595_s19 = scalar_lea.hbm (!%p242_p9), %s1028_s7, %s962_s16 }
  0x12   : > { %s660_s15 = sshll.u32 (!%p242_p9), %s269_s14, 1  ;;  %s599_s21 = sshll.u32 (!%p242_p9), %s595_s19, 4  ;;  %s600_s21 = int_to_ptr.hbm [resolvable:$true] %s599_s21 }
  0x13   : > { %s585_s22 = scalar_lea.sflag (!%p242_p9), [#allocation4], %s269_s14  ;;  %s771_s23 = sshra.s32 (!%p242_p9), %s600_s21, 4  ;;  %s772_s23 = int_to_ptr.hbm [resolvable:$true] %s771_s23 }
  0x14   : > { %s777_s30 = scalar_lea.hbm (!%p242_p9), %s1028_s7, 4  ;;  %p778_p0 = scmp.lt.s32.totalorder (!%p242_p9), %s772_s23, %s1028_s7 }
  0x15   : > { %v318_v0 = vld [vmem:[%s1023_s2 + $0x10] sm:$0xff]  ;;  %v319_v1 = vld [vmem:[%s1023_s2 + $0x18] sm:$0xff]  ;;  %v821_v3 = vmov 0   ;;  %v279_v4 = vld [vmem:[%s1022_s1] sm:$0xff]  ;;  %s274_s17 = scalar_select %p273_p10, %s962_s16, 3  ;;  %vm412_vm0 = vcmask 261120  }
  0x16   : > { %v282_v2 = vld [vmem:[%s1022_s1 + $0x18] sm:$0xff]  ;;  %724 = vset.pattern.permute.xlu2 %v821_v3  ;;  %723 = vset.pattern.permute.xlu1 %v821_v3  ;;  %v281_v5 = vld [vmem:[%s1022_s1 + $0x10] sm:$0xff]  ;;  %v280_v6 = vld [vmem:[%s1022_s1 + $0x8] sm:$0xff]  ;;  %vm576_vm1 = vcmask 1040384   ;;  %s773_s16 = scalar_lea.hbm %s772_s23, 2 }
  0x17   : > { %722 = vset.pattern.permute.xlu0 %v821_v3  ;;  %332 = vperm.xlu2 %724, %v318_v0   ;;  %v388_v7 = vld [vmem:[%s1025_s4] sm:$0xff]  ;;  %v317_v8 = vld [vmem:[%s1023_s2 + $0x8] sm:$0xff]  ;;  %v391_v10 = vld [vmem:[%s1025_s4 + $0x18] sm:$0xff]  ;;  %s275_s20 = scalar_lea.vmem %s1021_s0, %s274_s17  ;;  %p774_p11 = scmp.ne.s32.totalorder %s772_s23, %s773_s16 }
  0x18   : > { %337 = vperm.xlu1 %723, %v319_v1   ;;  %300 = vperm.xlu0 %722, %v282_v2   ;;  %v316_v9 = vld [vmem:[%s1023_s2] sm:$0xff]  ;;  %v389_v11 = vld [vmem:[%s1025_s4 + $0x8] sm:$0xff]  ;;  %v390_v12 = vld [vmem:[%s1025_s4 + $0x10] sm:$0xff]  ;;  %p779_p1 = scmp.lt.s32.totalorder %s777_s30, %s773_s16 }
  0x19   : > { %v517_v13 = vld [vmem:[%s1026_s5 + $0x10] sm:$0xff]  ;;  %v515_v14 = vld [vmem:[%s1026_s5] sm:$0xff]  ;;  %v516_v15 = vld [vmem:[%s1026_s5 + $0x8] sm:$0xff]  ;;  %p775_p12 = pnand %p774_p11, %p902_p5 }
  0x1a   : > { %v521_v16 = vand.u32 2147483647, %v517_v13  ;;  %v519_v17 = vand.u32 2147483647, %v515_v14  ;;  %v520_v18 = vand.u32 2147483647, %v516_v15  ;;  %p780_p2 = por %p779_p1, %p778_p0 }
  0x1b   : > { %v518_v19 = vld [vmem:[%s1026_s5 + $0x18] sm:$0xff]  ;;  %v278_v21 = vld [vmem:[%s275_s20] sm:$0x3]  ;;  %s271_s20 = scalar_lea.vmem [#allocation3], %s660_s15  ;;  %p776_p13 = pneg %p775_p12 }
  0x1c   : > { %v522_v20 = vand.u32 2147483647, %v518_v19  ;;  %v304_v22 = vperm.slane %v278_v21, 0  ;;  %v305_v23 = vperm.slane %v278_v21, 1  ;;  %v383_v21 = vld [vmem:[%s1024_s3 + $0x18] sm:$0xff]  ;;  %s597_s6 = sshll.u32 %s271_s20, 4  ;;  %s598_s6 = int_to_ptr.vmem [resolvable:$true] %s597_s6 }
  0x1d   : > { %p781_p3 = pnand %p780_p2, %p776_p13 }
  0x1f   : > { %285 = vperm.xlu2 %724, %v279_v4  }
  0x20   : > { %295 = vperm.xlu0 %722, %v281_v5   ;;  %290 = vperm.xlu1 %723, %v280_v6  }
  0x27   : > { %394 = vperm.xlu2 %724, %v388_v7  }
  0x28   : > { %327 = vperm.xlu0 %722, %v317_v8   ;;  %322 = vperm.xlu1 %723, %v316_v9   ;;  %v380_v9 = vld [vmem:[%s1024_s3] sm:$0xff] }
  0x2f   : > { %409 = vperm.xlu2 %724, %v391_v10   ;;  %v382_v10 = vld [vmem:[%s1024_s3 + $0x10] sm:$0xff] }
  0x30   : > { %399 = vperm.xlu0 %722, %v389_v11   ;;  %404 = vperm.xlu1 %723, %v390_v12  }
  0x37   : > { %535 = vperm.xlu2 %724, %v521_v16  }
  0x38   : > { %525 = vperm.xlu0 %722, %v519_v17   ;;  %530 = vperm.xlu1 %723, %v520_v18   ;;  %v384_v17 = vand.u32 2147483647, %v380_v9  ;;  %v386_v18 = vand.u32 2147483647, %v382_v10 }
  0x40   : > { %540 = vperm.xlu0 %722, %v522_v20   ;;  %v381_v20 = vld [vmem:[%s1024_s3 + $0x8] sm:$0xff] }
  0x71   : > { %v333_v28 = vpop.permute.xlu2 %332 }
  0x79   : > { %v286_v40 = vpop.permute.xlu2 %285 }
  0x7a   : > { %v308_v44 = vmul.f32 %v304_v22, %v286_v40  ;;  %v309_v45 = vmul.f32 %v305_v23, %v286_v40 }
  0x8a   : > { %v338_v24 = vpop.permute.xlu1 %337  ;;  %v301_v25 = vpop.permute.xlu0 %300 }
  0x8b   : > { %v314_v26 = vmul.f32 %v304_v22, %v301_v25  ;;  %v315_v27 = vmul.f32 %v305_v23, %v301_v25 }
  0x8d   : > { %v346_v29 = vadd.f32 %v338_v24, %v314_v26  ;;  %v347_v30 = vadd.f32 %v338_v24, %v315_v27  ;;  %v395_v24 = vpop.permute.xlu2 %394 }
  0x8f   : > { %v354_v31 = vmul.f32 0.5, %v346_v29  ;;  %v355_v32 = vmul.f32 0.5, %v347_v30 }
  0x91   : > { %725 = vtanh.f32 %v354_v31 }
  0x92   : > { %v296_v33 = vpop.permute.xlu0 %295  ;;  %v291_v34 = vpop.permute.xlu1 %290  ;;  %727 = vtanh.f32 %v355_v32 }
  0x93   : > { %v312_v35 = vmul.f32 %v304_v22, %v296_v33  ;;  %v313_v36 = vmul.f32 %v305_v23, %v296_v33  ;;  %v310_v47 = vmul.f32 %v304_v22, %v291_v34  ;;  %v311_v48 = vmul.f32 %v305_v23, %v291_v34 }
  0x94   : > { %v385_v22 = vand.u32 2147483647, %v381_v20  ;;  %v387_v23 = vand.u32 2147483647, %v383_v21 }
  0x95   : > { %v344_v37 = vadd.f32 %v333_v28, %v312_v35  ;;  %v345_v38 = vadd.f32 %v333_v28, %v313_v36 }
  0x97   : > { %v726_v39 = vpop.eup %725  ;;  %v352_v41 = vmul.f32 0.5, %v344_v37  ;;  %v353_v42 = vmul.f32 0.5, %v345_v38 }
  0x98   : > { %v728_v43 = vpop.eup %727  ;;  %v370_v46 = vmul.f32 0.5, %v726_v39 }
  0x99   : > { %v371_v49 = vmul.f32 0.5, %v728_v43  ;;  %729 = vtanh.f32 %v352_v41 }
  0x9a   : > { %v328_v50 = vpop.permute.xlu0 %327  ;;  %v323_v51 = vpop.permute.xlu1 %322  ;;  %v378_v52 = vadd.f32 0.5, %v370_v46  ;;  %731 = vtanh.f32 %v353_v42 }
  0x9b   : > { %v342_v53 = vadd.f32 %v328_v50, %v310_v47  ;;  %v343_v54 = vadd.f32 %v328_v50, %v311_v48  ;;  %v340_v55 = vadd.f32 %v323_v51, %v308_v44  ;;  %v341_v56 = vadd.f32 %v323_v51, %v309_v45  ;;  %v410_v47 = vpop.permute.xlu2 %409 }
  0x9c   : > { %437 = vmatpush.msra.mxu0 %v378_v52  ;;  %674 = vmatpush.msra.mxu2 %v378_v52  ;;  %v379_v57 = vadd.f32 0.5, %v371_v49 }
  0x9d   : > { %v350_v58 = vmul.f32 0.5, %v342_v53  ;;  %v351_v59 = vmul.f32 0.5, %v343_v54  ;;  %v348_v60 = vmul.f32 0.5, %v340_v55  ;;  %v349_v61 = vmul.f32 0.5, %v341_v56 }
  0x9e   : > { %466 = vmatpush.msra.mxu1 %v379_v57  ;;  %678 = vmatpush.msra.mxu3 %v379_v57 }
  0x9f   : > { %v730_v62 = vpop.eup %729  ;;  %733 = vtanh.f32 %v350_v58 }
  0xa0   : > { %v732_v63 = vpop.eup %731  ;;  %735 = vtanh.f32 %v351_v59  ;;  %v368_v0 = vmul.f32 0.5, %v730_v62 }
  0xa1   : > { %737 = vtanh.f32 %v348_v60  ;;  %v369_v1 = vmul.f32 0.5, %v732_v63 }
  0xa2   : > { %739 = vtanh.f32 %v349_v61  ;;  %v376_v2 = vadd.f32 0.5, %v368_v0  ;;  %v405_v31 = vpop.permute.xlu1 %404  ;;  %v400_v35 = vpop.permute.xlu0 %399 }
  0xa3   : > { %v377_v3 = vadd.f32 0.5, %v369_v1 }
  0xa4   : > { %438 = vmatpush.msra.mxu0 %v376_v2  ;;  %675 = vmatpush.msra.mxu2 %v376_v2 }
  0xa5   : > { %v734_v4 = vpop.eup %733  ;;  %467 = vmatpush.msra.mxu1 %v377_v3  ;;  %679 = vmatpush.msra.mxu3 %v377_v3 }
  0xa6   : > { %v736_v5 = vpop.eup %735  ;;  %v366_v6 = vmul.f32 0.5, %v734_v4 }
  0xa7   : > { %v738_v7 = vpop.eup %737  ;;  %v367_v8 = vmul.f32 0.5, %v736_v5 }
  0xa8   : > { %v740_v11 = vpop.eup %739  ;;  %v374_v12 = vadd.f32 0.5, %v366_v6  ;;  %v364_v13 = vmul.f32 0.5, %v738_v7 }
  0xa9   : > { %v375_v14 = vadd.f32 0.5, %v367_v8  ;;  %v365_v15 = vmul.f32 0.5, %v740_v11 }
  0xaa   : > { %439 = vmatpush.msra.mxu0 %v374_v12  ;;  %676 = vmatpush.msra.mxu2 %v374_v12  ;;  %v372_v16 = vadd.f32 0.5, %v364_v13  ;;  %v526_v59 = vpop.permute.xlu0 %525  ;;  %v531_v4 = vpop.permute.xlu1 %530 }
  0xab   : > { %468 = vmatpush.msra.mxu1 %v375_v14  ;;  %680 = vmatpush.msra.mxu3 %v375_v14  ;;  %v373_v19 = vadd.f32 0.5, %v365_v15 }
  0xac   : > { %440 = vmatpush.msra.mxu0 %v372_v16  ;;  %677 = vmatpush.msra.mxu2 %v372_v16  ;;  %v536_v16 = vpop.permute.xlu2 %535 }
  0xad   : > { %469 = vmatpush.msra.mxu1 %v373_v19  ;;  %681 = vmatpush.msra.mxu3 %v373_v19 }
  0xae   : > { %662 = vmatmul.msk.f32.vlgmr.msra.gmra.mxu0 %vm412_vm0, %v384_v17  ;;  %664 = vmatmul.msk.f32.vlgmr.msra.gmra.mxu2 %vm412_vm0, %v386_v18 }
  0xaf   : > { %666 = vmatmul.msk.f32.vlgmr.msra.gmra.mxu1 %vm412_vm0, %v384_v17  ;;  %668 = vmatmul.msk.f32.vlgmr.msra.gmra.mxu3 %vm412_vm0, %v386_v18 }
  0xb2   : > { %v541_v21 = vpop.permute.xlu0 %540 }
  0xb6   : > { %663 = vmatmul.msk.f32.gmra.mxu0 %vm412_vm0, %v385_v22  ;;  %665 = vmatmul.msk.f32.gmra.mxu2 %vm412_vm0, %v387_v23 }
  0xb7   : > { %667 = vmatmul.msk.f32.gmra.mxu1 %vm412_vm0, %v385_v22  ;;  %669 = vmatmul.msk.f32.gmra.mxu3 %vm412_vm0, %v387_v23 }
 0x12b   : > { %v442_v25 = vpop.f32.mrf.mxu0 }
 0x12c   : > { %v443_v26 = vadd.f32 %v442_v25, %v395_v24  ;;  %v471_v27 = vpop.f32.mrf.mxu1 }
 0x12d   : > { %v472_v28 = vadd.f32 %v471_v27, %v395_v24 }
 0x12e   : > { %v483_v29 = vmul.f32 0.5, %v443_v26 }
 0x12f   : > { %v484_v30 = vmul.f32 0.5, %v472_v28 }
 0x130   : > { %741 = vtanh.f32 %v483_v29 }
 0x131   : > { %v448_v32 = vpop.f32.mrf.mxu2  ;;  %743 = vtanh.f32 %v484_v30 }
 0x132   : > { %v449_v33 = vadd.f32 %v448_v32, %v405_v31  ;;  %v477_v34 = vpop.f32.mrf.mxu3 }
 0x133   : > { %v478_v36 = vadd.f32 %v477_v34, %v405_v31  ;;  %v445_v37 = vpop.f32.mrf.mxu0 }
 0x134   : > { %v487_v38 = vmul.f32 0.5, %v449_v33  ;;  %v446_v39 = vadd.f32 %v445_v37, %v400_v35  ;;  %v474_v40 = vpop.f32.mrf.mxu1 }
 0x135   : > { %v488_v41 = vmul.f32 0.5, %v478_v36  ;;  %v475_v42 = vadd.f32 %v474_v40, %v400_v35  ;;  %v570_v40 = vstv %s569_s10 }
 0x136   : > { %745 = vtanh.f32 %v487_v38  ;;  %v485_v43 = vmul.f32 0.5, %v446_v39  ;;  %v742_v45 = vpop.eup %741 }
 0x137   : > { %747 = vtanh.f32 %v488_v41  ;;  %v486_v44 = vmul.f32 0.5, %v475_v42  ;;  %v744_v46 = vpop.eup %743  ;;  %v499_v51 = vmul.f32 0.5, %v742_v45 }
 0x138   : > { %749 = vtanh.f32 %v485_v43  ;;  %v500_v54 = vmul.f32 0.5, %v744_v46  ;;  %v579_v43 = vlaneseq }
 0x139   : > { %751 = vtanh.f32 %v486_v44  ;;  %v451_v48 = vpop.f32.mrf.mxu2  ;;  %v507_v61 = vadd.f32 0.5, %v499_v51 }
 0x13a   : > { %v452_v49 = vadd.f32 %v451_v48, %v410_v47  ;;  %v480_v50 = vpop.f32.mrf.mxu3  ;;  %v508_v0 = vadd.f32 0.5, %v500_v54  ;;  %vm581_vm2 = vcmp.lt.s32.totalorder %v579_v43, 256 }
 0x13b   : > { %v481_v52 = vadd.f32 %v480_v50, %v410_v47  ;;  %v543_v6 = vmul.f32 %v526_v59, %v507_v61 }
 0x13c   : > { %v746_v53 = vpop.eup %745  ;;  %v489_v55 = vmul.f32 0.5, %v452_v49  ;;  %v544_v10 = vmul.f32 %v526_v59, %v508_v0 }
 0x13d   : > { %v748_v56 = vpop.eup %747  ;;  %v490_v57 = vmul.f32 0.5, %v481_v52  ;;  %v503_v62 = vmul.f32 0.5, %v746_v53 }
 0x13e   : > { %v750_v58 = vpop.eup %749  ;;  %753 = vtanh.f32 %v489_v55  ;;  %v504_v1 = vmul.f32 0.5, %v748_v56 }
 0x13f   : > { %v752_v60 = vpop.eup %751  ;;  %v501_v63 = vmul.f32 0.5, %v750_v58  ;;  %755 = vtanh.f32 %v490_v57  ;;  %v511_v7 = vadd.f32 0.5, %v503_v62 }
 0x140   : > { %v502_v2 = vmul.f32 0.5, %v752_v60  ;;  %v512_v11 = vadd.f32 0.5, %v504_v1 }
 0x141   : > { %v509_v3 = vadd.f32 0.5, %v501_v63  ;;  %v547_v19 = vmul.f32 %v536_v16, %v511_v7 }
 0x142   : > { %v510_v5 = vadd.f32 0.5, %v502_v2  ;;  %v548_v22 = vmul.f32 %v536_v16, %v512_v11 }
 0x143   : > { %v545_v8 = vmul.f32 %v531_v4, %v509_v3 }
 0x144   : > { %v754_v9 = vpop.eup %753  ;;  %v546_v12 = vmul.f32 %v531_v4, %v510_v5 }
 0x145   : > { %v756_v13 = vpop.eup %755  ;;  %v551_v14 = vadd.f32 %v545_v8, %v543_v6  ;;  %v505_v15 = vmul.f32 0.5, %v754_v9 }
 0x146   : > { %v560_v17 = vadd.f32 %v546_v12, %v544_v10  ;;  %v506_v18 = vmul.f32 0.5, %v756_v13 }
 0x147   : > { %v513_v20 = vadd.f32 0.5, %v505_v15  ;;  %v552_v25 = vadd.f32 %v551_v14, %v547_v19 }
 0x148   : > { %v514_v23 = vadd.f32 0.5, %v506_v18  ;;  %v561_v27 = vadd.f32 %v560_v17, %v548_v22 }
 0x149   : > { %v549_v24 = vmul.f32 %v541_v21, %v513_v20 }
 0x14a   : > { %v550_v26 = vmul.f32 %v541_v21, %v514_v23 }
 0x14b   : > { %v553_v28 = vadd.f32 %v552_v25, %v549_v24 }
 0x14c   : > { %v562_v29 = vadd.f32 %v561_v27, %v550_v26 }
 0x14d   : > { %v554_v30 = vrot.slane %v553_v28, 4 }
 0x14e   : > { %v563_v31 = vrot.slane %v562_v29, 4 }
 0x14f   : > { %v555_v32 = vadd.f32 %v554_v30, %v553_v28 }
 0x150   : > { %v564_v33 = vadd.f32 %v563_v31, %v562_v29 }
 0x151   : > { %v556_v34 = vrot.slane %v555_v32, 2 }
 0x152   : > { %v565_v35 = vrot.slane %v564_v33, 2 }
 0x153   : > { %v557_v36 = vadd.f32 %v556_v34, %v555_v32 }
 0x154   : > { %v566_v37 = vadd.f32 %v565_v35, %v564_v33 }
 0x155   : > { %v558_v38 = vrot.slane %v557_v36, 1 }
 0x156   : > { %v567_v39 = vrot.slane %v566_v37, 1 }
 0x157   : > { %v559_v41 = vadd.f32 %v558_v38, %v557_v36 }
 0x158   : > { %v568_v42 = vadd.f32 %v567_v39, %v566_v37 }
 0x159   : > { %v571_v45 = vadd.f32 %v570_v40, %v559_v41 }
 0x15a   : > { %v572_v44 = vadd.f32 %v570_v40, %v568_v42 }
 0x15c   : > { %v575_v46 = vrot.slane %v572_v44, 7 }
 0x15e   : > { %v577_v47 = vsel %vm576_vm1, %v571_v45, %v575_v46 }
 0x15f   : > { %583 = vst.msk [vmem:[%s271_s20] sm:$0x3] %vm581_vm2, %v577_v47 }
 0x160   : > { %784 = shalt.err (!%p781_p3)
}
 0x161   : > { %682 = dma.vmem_to_hbm [thread:$0]  (%p902_p5), %s598_s6, 32, %s600_s21, %s585_s22  }
 0x162 PF: > { %p688_p4 = scmp.ge.s32.totalorder %s819_s29, 2  ;;  %s611_s14 = sand.u32 1, %s807_s26  }
 0x163   : > { %s612_s15 = scalar_lea.sflag [#allocation4], %s611_s14 }
 0x164   : > { %p685_p7 = pnand %p688_p4, %p906_p6 }
 0x166   : > { %p686_p8 = pneg %p685_p7 }
 0x168   : > { %802 = dma.done.wait (%p686_p8), %s612_s15, 32  }
 0x169   : > { %804 = vsyncadd (%p686_p8), %s612_s15, 4294967264  ;;  %p18_p9 = scmp.ge.s32.totalorder %s888_s8, 4   ;;  %s1031_s26 = smov %s811_s27 }
 0x16a   : > { %s1032_s27 = smov %s815_s28  ;;  %s1033_s28 = smov %s900_s11 }
 0x16b   : > { %s1034_s29 = smov %s888_s8  ;;  %20 = sbr.rel (!%p18_p9) target bundleno = 5 (0x5), region = 83 }
 0x170   :  { %618 = vsyncpa [#allocation4], 1 }
 0x171   :  { %620 = vsyncpa [#allocation4 + $0x1], 1 }

</bundles_post_ra>
